<compile_context>
chip_gen: v7x
topology: tpu7x:2x2x1
jax: 0.10.0
libtpu: 0.0.40
codegen_flags: <defaults>
</compile_context>

<pallas_src>
import functools

import jax
import jax.numpy as jnp
from jax.experimental import pallas as pl
from jax.experimental.pallas import tpu as pltpu


def _inter_soft_embedding_kernel(n_pre, n_soft, vocab, seq_tile,
                                 tok_ref,        # SMEM (scalar prefetch): tokens [B, S]
                                 wte_hbm,        # HBM ref: [V, D]
                                 learned_hbm,    # HBM ref: [n_soft, D]
                                 out_ref,        # VMEM out block: (1, seq_tile, D)
                                 row_buf,        # VMEM scratch: (seq_tile, D)
                                 sem):           # single shared DMA semaphore
    b = pl.program_id(0)
    t = pl.program_id(1)
    s0 = t * seq_tile

    # Phase 1: issue one row-gather DMA per output row of this tile.
    # All SMEM token reads happen before any DMA wait (no sst->sld stall).
    def issue(r, carry):
        s = s0 + r
        in_soft = jnp.logical_and(s >= n_pre, s < n_pre + n_soft)
        dst = row_buf.at[pl.ds(r, 1)]

        @pl.when(in_soft)
        def _():
            j = jnp.clip(s - n_pre, 0, max(n_soft - 1, 0))
            pltpu.make_async_copy(learned_hbm.at[pl.ds(j, 1)], dst, sem).start()

        @pl.when(jnp.logical_not(in_soft))
        def _():
            tok = jnp.clip(tok_ref[b, s], 0, vocab - 1)
            pltpu.make_async_copy(wte_hbm.at[pl.ds(tok, 1)], dst, sem).start()

        return carry

    jax.lax.fori_loop(0, seq_tile, issue, 0)

    # Phase 2: wait for all gathers (identical-size copies share one semaphore,
    # so seq_tile waits exactly balance seq_tile completions).
    def wait(r, carry):
        pltpu.make_async_copy(wte_hbm.at[pl.ds(0, 1)],
                              row_buf.at[pl.ds(r, 1)], sem).wait()
        return carry

    jax.lax.fori_loop(0, seq_tile, wait, 0)

    # Phase 3: one dense (1, seq_tile, D) store (seq_tile chosen as multiple of 8).
    out_ref[...] = row_buf[...].reshape(out_ref.shape)


def _pick_seq_tile(S, max_tile=512):
    """Largest divisor of S <= max_tile, preferring a multiple of 8 (dense sublanes)."""
    divs = [d for d in range(1, min(S, max_tile) + 1) if S % d == 0]
    mult8 = [d for d in divs if d % 8 == 0]
    return (mult8 or divs)[-1]


def inter_soft_embedding(tokens, wte_weight, learned_embedding,
                         n_pre_tokens, n_tokens, seq_tile=None):
    """Pallas implementation of InterSoftEmbedding.forward."""
    B, S = tokens.shape
    V, D = wte_weight.shape
    assert learned_embedding.shape == (n_tokens, D)
    assert S >= n_pre_tokens + n_tokens

    tokens = tokens.astype(jnp.int32)
    learned = learned_embedding.astype(wte_weight.dtype)  # explicit cast (numerics)

    if seq_tile is None:
        seq_tile = _pick_seq_tile(S)
    assert S % seq_tile == 0, (S, seq_tile)
    num_tiles = S // seq_tile

    kernel = functools.partial(_inter_soft_embedding_kernel,
                               n_pre_tokens, n_tokens, V, seq_tile)

    # Explicit VMEM budget with headroom, capped at 32 MiB so it is valid on
    # v5e (16 MiB scoped default), v6e (128 MiB phys) and v7x (64 MiB phys).
    out_block_bytes = seq_tile * D * jnp.dtype(wte_weight.dtype).itemsize
    vmem_bytes = min(max(16 * out_block_bytes, 8 << 20), 32 << 20)

    return pl.pallas_call(
        kernel,
        out_shape=jax.ShapeDtypeStruct((B, S, D), wte_weight.dtype),
        grid_spec=pltpu.PrefetchScalarGridSpec(
            num_scalar_prefetch=1,
            grid=(B, num_tiles),
            in_specs=[
                pl.BlockSpec(memory_space=pl.ANY),   # wte table stays in HBM (manual gather)
                pl.BlockSpec(memory_space=pl.ANY),   # learned table stays in HBM (row DMA only in soft region)
            ],
            out_specs=pl.BlockSpec((1, seq_tile, D), lambda b, t, tok: (b, t, 0)),
            scratch_shapes=[
                pltpu.VMEM((seq_tile, D), wte_weight.dtype),
                pltpu.SemaphoreType.DMA(()),
            ],
        ),
        compiler_params=pltpu.CompilerParams(
            dimension_semantics=("parallel", "parallel"),
            vmem_limit_bytes=vmem_bytes,
        ),
    )(tokens, wte_weight, learned)


def reference(tokens, wte_weight, learned_embedding, n_pre_tokens, n_tokens):
    """Pure-JAX reference mirroring the PyTorch forward."""
    pre = wte_weight[tokens[:, :n_pre_tokens]]
    learned = jnp.broadcast_to(learned_embedding[None],
                               (tokens.shape[0],) + learned_embedding.shape)
    after = wte_weight[tokens[:, n_tokens + n_pre_tokens:]]
    return jnp.concatenate([pre, learned, after], axis=1)


if __name__ == "__main__":
    # Small deterministic setup. seq_tile=8 makes the soft region [5, 11)
    # straddle a tile boundary, exercising the cross-tile path.
    B, S = 2, 32
    V, D = 64, 128
    n_pre_tokens, n_tokens = 5, 6

    key = jax.random.PRNGKey(0)
    k_wte, k_learned, k_tok = jax.random.split(key, 3)

    wte_weight = jax.random.normal(k_wte, (V, D), dtype=jnp.float32)
    # initialize_from_vocab=False path: uniform(-0.5, 0.5), distinct from wte rows.
    learned_embedding = jax.random.uniform(k_learned, (n_tokens, D),
                                           minval=-0.5, maxval=0.5,
                                           dtype=jnp.float32)
    tokens = jax.random.randint(k_tok, (B, S), minval=0, maxval=V, dtype=jnp.int32)

    out = inter_soft_embedding(tokens, wte_weight, learned_embedding,
                               n_pre_tokens, n_tokens, seq_tile=8)
    out = jax.block_until_ready(out)

    ref = reference(tokens, wte_weight, learned_embedding, n_pre_tokens, n_tokens)
    assert out.shape == (B, S, D), out.shape
    assert jnp.allclose(out, ref), "Pallas output does not match reference"

    print("KERNEL_OK")
</pallas_src>

<mosaic_0001>
module attributes {stable_mosaic.version = 11 : i64} {
  func.func @_inter_soft_embedding_kernel(%arg0: i32, %arg1: i32, %arg2: memref<2x32xi32, #tpu.memory_space<smem>>, %arg3: memref<64x128xf32, #tpu.memory_space<any>>, %arg4: memref<6x128xf32, #tpu.memory_space<any>>, %arg5: memref<1x8x128xf32, #tpu.memory_space<vmem>>, %arg6: memref<8x128xf32, #tpu.memory_space<vmem>>, %arg7: memref<!tpu.dma_semaphore, #tpu.memory_space<semaphore_mem>>) attributes {dimension_semantics = [#tpu.dimension_semantics<parallel>, #tpu.dimension_semantics<parallel>], iteration_bounds = array<i64: 2, 4>, scalar_prefetch = 1 : i64, scratch_operands = 2 : i64, tpu.core_type = #tpu.core_type<tc>, window_params = [{}, {}, {transform_indices = @transform_2, window_bounds = array<i64: 1, 8, 128>}]} {
    %c8_i32 = arith.constant 8 : i32
    %0 = arith.muli %arg1, %c8_i32 : i32
    %c0_i32 = arith.constant 0 : i32
    %c8_i32_0 = arith.constant 8 : i32
    %1 = arith.addi %c0_i32, %c8_i32_0 : i32
    %c1_i32 = arith.constant 1 : i32
    scf.for %arg8 = %c0_i32 to %1 step %c1_i32  : i32 {
      %6 = arith.addi %0, %arg8 : i32
      %c5_i32 = arith.constant 5 : i32
      %7 = arith.cmpi sge, %6, %c5_i32 : i32
      %c11_i32 = arith.constant 11 : i32
      %8 = arith.cmpi slt, %6, %c11_i32 : i32
      %9 = arith.andi %7, %8 : i1
      %10 = arith.extui %9 : i1 to i32
      %c0_i32_10 = arith.constant 0 : i32
      %11 = arith.cmpi ne, %10, %c0_i32_10 : i32
      scf.if %11 {
        %c5_i32_12 = arith.constant 5 : i32
        %15 = arith.subi %6, %c5_i32_12 : i32
        %c0_i32_13 = arith.constant 0 : i32
        %c5_i32_14 = arith.constant 5 : i32
        %16 = arith.maxsi %c0_i32_13, %15 : i32
        %17 = arith.minsi %c5_i32_14, %16 : i32
        %c0_i32_15 = arith.constant 0 : i32
        %18 = tpu.memref_slice %arg4[%17, %c0_i32_15] : memref<6x128xf32, #tpu.memory_space<any>> -> memref<1x128xf32, #tpu.memory_space<any>>
        %c0_i32_16 = arith.constant 0 : i32
        %19 = tpu.memref_slice %arg6[%arg8, %c0_i32_16] : memref<8x128xf32, #tpu.memory_space<vmem>> -> memref<1x128xf32, #tpu.memory_space<vmem>>
        tpu.enqueue_dma source(%18 : memref<1x128xf32, #tpu.memory_space<any>>) target(%19 : memref<1x128xf32, #tpu.memory_space<vmem>>) target_semaphore(%arg7 : memref<!tpu.dma_semaphore, #tpu.memory_space<semaphore_mem>>)
      } else {
      }
      %true = arith.constant true
      %12 = arith.xori %9, %true : i1
      %13 = arith.extui %12 : i1 to i32
      %c0_i32_11 = arith.constant 0 : i32
      %14 = arith.cmpi ne, %13, %c0_i32_11 : i32
      scf.if %14 {
        %15 = arith.index_cast %arg0 : i32 to index
        %16 = arith.index_cast %6 : i32 to index
        %17 = memref.load %arg2[%15, %16] : memref<2x32xi32, #tpu.memory_space<smem>>
        %c0_i32_12 = arith.constant 0 : i32
        %c63_i32 = arith.constant 63 : i32
        %18 = arith.maxsi %c0_i32_12, %17 : i32
        %19 = arith.minsi %c63_i32, %18 : i32
        %c0_i32_13 = arith.constant 0 : i32
        %20 = tpu.memref_slice %arg3[%19, %c0_i32_13] : memref<64x128xf32, #tpu.memory_space<any>> -> memref<1x128xf32, #tpu.memory_space<any>>
        %c0_i32_14 = arith.constant 0 : i32
        %21 = tpu.memref_slice %arg6[%arg8, %c0_i32_14] : memref<8x128xf32, #tpu.memory_space<vmem>> -> memref<1x128xf32, #tpu.memory_space<vmem>>
        tpu.enqueue_dma source(%20 : memref<1x128xf32, #tpu.memory_space<any>>) target(%21 : memref<1x128xf32, #tpu.memory_space<vmem>>) target_semaphore(%arg7 : memref<!tpu.dma_semaphore, #tpu.memory_space<semaphore_mem>>)
      } else {
      }
    }
    %c8_i32_1 = arith.constant 8 : i32
    %c0_i32_2 = arith.constant 0 : i32
    %c8_i32_3 = arith.constant 8 : i32
    %2 = arith.addi %c0_i32_2, %c8_i32_3 : i32
    %c1_i32_4 = arith.constant 1 : i32
    scf.for %arg8 = %c0_i32_2 to %2 step %c1_i32_4  : i32 {
      %c0_i32_10 = arith.constant 0 : i32
      %c0_i32_11 = arith.constant 0 : i32
      %6 = tpu.memref_slice %arg3[%c0_i32_10, %c0_i32_11] : memref<64x128xf32, #tpu.memory_space<any>> -> memref<1x128xf32, #tpu.memory_space<any>>
      %c0_i32_12 = arith.constant 0 : i32
      %7 = tpu.memref_slice %arg6[%arg8, %c0_i32_12] : memref<8x128xf32, #tpu.memory_space<vmem>> -> memref<1x128xf32, #tpu.memory_space<vmem>>
      tpu.wait_dma2 semaphore(%arg7 : memref<!tpu.dma_semaphore, #tpu.memory_space<semaphore_mem>>) src(%6 : memref<1x128xf32, #tpu.memory_space<any>>) dst(%7 : memref<1x128xf32, #tpu.memory_space<vmem>>)
    }
    %c8_i32_5 = arith.constant 8 : i32
    %c0 = arith.constant 0 : index
    %c0_6 = arith.constant 0 : index
    %3 = vector.load %arg6[%c0, %c0_6] : memref<8x128xf32, #tpu.memory_space<vmem>>, vector<8x128xf32>
    %4 = vector.shape_cast %3 : vector<8x128xf32> to vector<1x8x128xf32>
    %c0_7 = arith.constant 0 : index
    %c0_8 = arith.constant 0 : index
    %c0_9 = arith.constant 0 : index
    %5 = vector.load %arg5[%c0_7, %c0_8, %c0_9] : memref<1x8x128xf32, #tpu.memory_space<vmem>>, vector<1x8x128xf32>
    tpu.vector_store %arg5[%c0_7, %c0_8, %c0_9], %4 {strides = array<i32>} : memref<1x8x128xf32, #tpu.memory_space<vmem>>, vector<1x8x128xf32>,
    return
  }
  func.func @transform_2(%arg0: i32, %arg1: i32, %arg2: memref<2x32xi32, #tpu.memory_space<smem>>) -> (i32, i32, i32) {
    %c0_i32 = arith.constant 0 : i32
    %c0_i32_0 = arith.constant 0 : i32
    return %arg0, %arg1, %c0_i32 : i32, i32, i32
  }
}

</mosaic_0001>

<bundles_post_ra>
// kernel: tpu_custom_call.1
= control target key start
LH: loop header
LB: loop body
LE: loop exit
PB: predicated region body
PF: predicated region fallthrough
CT: control target
= control target key end

     0   :  { %s723_s0 = inlined_call_operand.hbm [shape: s32[2,32], index: 0, kind: input, shape index: {}]   ;;  %s724_s1 = inlined_call_operand.hbm [shape: f32[64,128], index: 1, kind: input, shape index: {}]   ;;  %s725_s2 = inlined_call_operand.hbm [shape: f32[6,128], index: 2, kind: input, shape index: {}]   ;;  %s726_s3 = inlined_call_operand.hbm [shape: f32[2,32,128], index: 3, kind: output, shape index: {}]  }
   0x1   :  { %730 = sst [smem:[#allocation18_spill]] %s725_s2  ;;  %s325_s14 = scalar_lea.hbm %s723_s0, 32 }
   0x2   :  { %p326_p0 = scmp.ne.s32.totalorder %s723_s0, %s325_s14  ;;  %p329_p1 = scmp.lt.u32.totalorder %s325_s14, %s723_s0 }
   0x4   :  { %p331_p2 = pnand %p329_p1, %p326_p0 }
   0x6   :  { %334 = shalt.err (!%p331_p2)  }
   0x7   :  { %s485_s19 = smov [#allocation5]  }
   0x8   :  { %9 = dma.hbm_to_smem %s723_s0, 32, %s485_s19, [#allocation4] }
   0x9   :  { %449 = dma.done.wait [#allocation4], 32 }
   0xa   :  { %450 = vsyncadd [#allocation4], 4294967264 }
   0xb   :  { %11 = sfence }
   0xc   :  { %12 = vsyncpa [#allocation7], 0 }
   0xd   :  { %14 = vsyncpa [#allocation7 + $0x1], 0  ;;  %s520_s22 = smov 0   ;;  %s522_s23 = smov 0  }
   0xe   :  { %s524_s24 = smov 0   ;;  %s526_s25 = smov 0  }
   0xf   :  { %s528_s26 = smov 0  }
  0x10 LB: > { %s26_s0 = sadd.s32 1, %s467_s24  ;;  %s29_s27 = sadd.s32 1, %s471_s25  ;;  %s475_s26 = sphi %s528_s26, %s20_s26   ;;  %s471_s25 = sphi %s526_s25, %s748_s25   ;;  %s467_s24 = sphi %s524_s24, %s747_s24   ;;  %s463_s23 = sphi %s522_s23, %s746_s23   ;;  %s459_s22 = sphi %s520_s22, %s745_s22  }
  0x11   : > { %p27_p3 = scmp.ge.s32.totalorder %s26_s0, 4  ;;  %s227_s28 = sadd.s32 4294967295, %s475_s26  }
  0x12   : > { %p47_p4 = scmp.ne.s32.totalorder %s463_s23, %s459_s22  ;;  %p48_p6 = scmp.eq.s32.totalorder %s227_s28, 7 }
  0x13   : > { %s750_s0 = smov (%p27_p3, %s26_s0), 0  ;;  %s752_s27 = smov (!%p27_p3, %s29_s27), %s471_s25 }
  0x14   : > { %p31_p5 = scmp.ge.s32.totalorder %s752_s27, 2  ;;  %s34_s29 = ssub.s32 %s467_s24, %s750_s0 }
  0x15   : > { %p557_p7 = por %p48_p6, %p47_p4  ;;  %s38_s5 = sadd.s32 1, %s463_s23 }
  0x16   : > { %s754_s27 = smov (%p31_p5, %s752_s27), 0  ;;  %p42_p8 = scmp.eq.s32.totalorder %s475_s26, 7 }
  0x17   : > { %s731_s30 = scalar_select %p557_p7, 1, 0 }
  0x18   : > { %s33_s4 = ssub.s32 %s471_s25, %s754_s27  ;;  %p229_p12 = scmp.ge.s32.totalorder %s475_s26, 8 }
  0x19   : > { %s35_s6 = sor.u32 %s34_s29, %s33_s4  ;;  %s727_s9 = sand.u32 (!%p229_p12), 1, %s463_s23  }
  0x1a   : > { %p36_p9 = scmp.eq.s32.totalorder %s35_s6, 0  ;;  %p228_p10 = scmp.ne.s32.totalorder %s35_s6, 0 }
  0x1b   : > { %57 = sbr.rel (%p229_p12) target bundleno = 143 (0x8f), region = 12  ;;  %s577_s11 = sshll.u32 (!%p229_p12), %s727_s9, 3 }
  0x1c   : > { %s566_s7 = scalar_select %p36_p9, %s463_s23, %s38_s5  }
  0x1d   : > { %p568_p11 = por %p228_p10, %p42_p8  ;;  %s580_s13 = smov (!%p229_p12), 0  }
  0x1f   : > { %s732_s8 = scalar_select %p568_p11, 1, 0 }
  0x22 LB: >> { %s733_s10 = sshll.u32 %s467_s24, 3  ;;  %s86_s17 = scalar_lea.vmem [#allocation2], %s479_s13  ;;  %s479_s13 = sphi %s580_s13, %s71_s13  }
  0x23   : >> { %s72_s14 = sadd.s32 %s479_s13, %s733_s10  ;;  %s94_s18 = sshll.u32 %s86_s17, 4  ;;  %s594_s18 = int_to_ptr.vmem [resolvable:$true] %s94_s18 }
  0x24   : >> { %p73_p13 = scmp.ge.s32.totalorder %s72_s14, 5  ;;  %p74_p0 = scmp.lt.s32.totalorder %s72_s14, 11 }
  0x25   : >> { %s232_s15 = sadd.s32 4294967291, %s72_s14  ;;  %s101_s19 = sshra.s32 %s72_s14, 7 }
  0x26   : >> { %p588_p1 = pnand %p74_p0, %p73_p13  ;;  %p80_p2 = scmp.gt.s32.totalorder %s232_s15, 0 }
  0x27   : >> { %p233_p3 = scmp.lt.s32.totalorder %s232_s15, 5  ;;  %s103_s20 = sadd.s32 %s471_s25, %s101_s19 }
  0x28   : >> { %s756_s15 = smov (!%p80_p2, %s232_s15), 0  ;;  %s106_s21 = sand.u32 127, %s72_s14 }
  0x29   : >> { %s758_s15 = smov (!%p233_p3, %s756_s15), 5  ;;  %s239_s28 = sshll.u32 %s103_s20, 7 }
  0x2a   : >> { %s238_s29 = sshll.u32 %s758_s15, 4  ;;  %s735_s2 = sld [smem:[#allocation18_spill]] }
  0x2b   : >> { %s599_s10 = sadd.s32 %s239_s28, %s106_s21  ;;  %p337_p5 = pneg %p588_p1 }
  0x30   : >> { %s85_s6 = scalar_lea.hbm %s735_s2, %s238_s29  ;;  %s340_s19 = scalar_lea.hbm %s735_s2, 128 }
  0x31   : >> { %s335_s9 = scalar_lea.hbm %s85_s6, 16  ;;  %p341_p9 = scmp.lt.u32.totalorder %s85_s6, %s735_s2 }
  0x32   : >> { %p336_p4 = scmp.ne.s32.totalorder %s85_s6, %s335_s9  ;;  %p342_p10 = scmp.lt.u32.totalorder %s340_s19, %s335_s9 }
  0x33   : >> { %p344_p13 = scmp.lt.u32.totalorder %s335_s9, %s85_s6 }
  0x34   : >> { %p338_p6 = pnand %p337_p5, %p336_p4  ;;  %p343_p12 = por %p342_p10, %p341_p9 }
  0x36   : >> { %p339_p8 = pneg %p338_p6  ;;  %p345_p0 = por %p344_p13, %p343_p12 }
  0x38   : >> { %p346_p2 = pnand %p345_p0, %p339_p8 }
  0x3a   : >> { %349 = shalt.err (!%p346_p2)  }
  0x3b   : >> { %s350_s21 = scalar_lea.vmem %s594_s18, 16  ;;  %s486_s29 = smov [#allocation2]  }
  0x3c   : >> { %p614_p3 = scmp.ne.s32.totalorder %s594_s18, %s350_s21  ;;  %s355_s9 = sshll.u32 %s486_s29, 4  ;;  %s356_s9 = int_to_ptr.vmem [resolvable:$false] %s355_s9 }
  0x3d   : >> { %s357_s4 = scalar_lea.vmem %s356_s9, 128  ;;  %p624_p8 = scmp.lt.s32.totalorder %s594_s18, %s356_s9 }
  0x3e   : >> { %p353_p4 = pnand %p614_p3, %p337_p5  ;;  %p628_p9 = scmp.lt.s32.totalorder %s357_s4, %s350_s21 }
  0x40   : >> { %p354_p6 = pneg %p353_p4  ;;  %p728_p5 = por %p628_p9, %p624_p8 }
  0x42   : >> { %p361_p10 = pnand %p728_p5, %p354_p6 }
  0x44   : >> { %364 = shalt.err (!%p361_p10)  }
  0x45   : >> { %257 = dma.hbm_to_vmem [thread:$0]  (!%p588_p1), %s85_s6, 16, %s594_s18, [#allocation3] }
  0x46   : >> { %s258_s17 = scalar_select %p588_p1, [#allocation5], [#allocation14] }
  0x47   : >> { %s760_s10 = smov (!%p588_p1, %s599_s10), 0  ;;  %s369_s12 = scalar_lea.hbm %s724_s1, 1024 }
  0x48   : >> { %s108_s19 = sld [smem:[%s258_s17 + %s760_s10]] }
  0x4e   : >> { %p109_p12 = scmp.gt.s32.totalorder %s108_s19, 0  ;;  %p240_p13 = scmp.lt.s32.totalorder %s108_s19, 63 }
  0x50   : >> { %s762_s19 = smov (!%p109_p12, %s108_s19), 0 }
  0x51   : >> { %s764_s19 = smov (!%p240_p13, %s762_s19), 63 }
  0x52   : >> { %s245_s20 = sshll.u32 %s764_s19, 4 }
  0x53   : >> { %s114_s29 = scalar_lea.hbm %s724_s1, %s245_s20 }
  0x54   : >> { %s365_s9 = scalar_lea.hbm %s114_s29, 16  ;;  %p370_p6 = scmp.lt.u32.totalorder %s114_s29, %s724_s1 }
  0x55   : >> { %p366_p0 = scmp.ne.s32.totalorder %s114_s29, %s365_s9  ;;  %p371_p10 = scmp.lt.u32.totalorder %s369_s12, %s365_s9 }
  0x56   : >> { %p373_p13 = scmp.lt.u32.totalorder %s365_s9, %s114_s29 }
  0x57   : >> { %p367_p2 = pnand %p366_p0, %p588_p1  ;;  %p372_p12 = por %p371_p10, %p370_p6 }
  0x59   : >> { %p368_p4 = pneg %p367_p2  ;;  %p374_p5 = por %p373_p13, %p372_p12 }
  0x5b   : >> { %p375_p7 = pnand %p374_p5, %p368_p4 }
  0x5d   : >> { %378 = shalt.err (!%p375_p7)  }
  0x5e   : >> { %p381_p0 = pnand %p614_p3, %p588_p1  ;;  %p739_p11 = por %p628_p9, %p624_p8 }
  0x60   : >> { %p382_p2 = pneg %p381_p0 }
  0x62   : >> { %p389_p6 = pnand %p382_p2, %p739_p11 }
  0x64   : >> { %392 = shalt.err (!%p389_p6)  }
  0x65   : >> { %260 = dma.hbm_to_vmem [thread:$0]  (%p588_p1), %s114_s29, 16, %s594_s18, [#allocation3] }
  0x66   : >> { %s71_s13 = sadd.s32 1, %s479_s13  }
  0x67   : >> { %p68_p7 = scmp.ge.s32.totalorder %s71_s13, 8  }
  0x68   : > { %s481_s2 = smov (%p68_p7), 0  }
  0x69   : > { %70 = sbr.rel (!%p68_p7) target bundleno = 34 (0x22), region = 78 }
  0x70 LB: >> { %451 = dma.done.wait [#allocation3], 16  ;;  %s483_s2 = sphi %s481_s2, %s132_s2  }
  0x71   : >> { %452 = vsyncadd [#allocation3], 4294967280  ;;  %s132_s2 = sadd.s32 1, %s483_s2  }
  0x72   : >> { %p129_p3 = scmp.ge.s32.totalorder %s132_s2, 8  }
  0x73   : > { %v136_v0 = vld [vmem:[#allocation2] sm:$0xff] (%p129_p3)  ;;  %s247_s12 = sshll.u32 (%p129_p3), %s471_s25, 2  ;;  %s740_s13 = scalar_lea.vmem (%p129_p3), [#allocation6], %s577_s11 }
  0x74   : > { %131 = sbr.rel (!%p129_p3) target bundleno = 112 (0x70), region = 89  ;;  %137 = vst [vmem:[%s740_s13] sm:$0xff] (%p129_p3), %v136_v0  ;;  %s150_s16 = sadd.s32 (%p129_p3), %s467_s24, %s247_s12 }
  0x75   : > { %s741_s18 = smov (%p129_p3), %s740_s13  ;;  %s248_s5 = sshll.u32 (%p129_p3), %s150_s16, 7 }
  0x76   : > { %s154_s28 = sshll.u32 (%p129_p3), %s741_s18, 4  ;;  %s152_s19 = scalar_lea.hbm (%p129_p3), %s726_s3, %s248_s5  ;;  %s681_s28 = int_to_ptr.vmem [resolvable:$true] %s154_s28 }
  0x77   : > { %s742_s20 = sand.u32 (%p129_p3), 1, %s463_s23   ;;  %s393_s21 = scalar_lea.vmem (%p129_p3), %s681_s28, 128 }
  0x78   : > { %s139_s15 = scalar_lea.sflag (%p129_p3), [#allocation7], %s742_s20  ;;  %p394_p11 = scmp.ne.s32.totalorder (%p129_p3), %s681_s28, %s393_s21 }
  0x79   : > { %p743_p1 = scmp.ne.s32.totalorder (%p129_p3), %s732_s8, 0  ;;  %s487_s24 = smov (%p129_p3), [#allocation6]  }
  0x7a   : > { %s397_s25 = sshll.u32 (%p129_p3), %s487_s24, 4  ;;  %s398_s25 = int_to_ptr.vmem [resolvable:$false] %s397_s25 }
  0x7b   : > { %p395_p8 = pnand %p394_p11, %p743_p1  ;;  %s399_s11 = scalar_lea.vmem %s398_s25, 256 }
  0x7c   : > { %p400_p5 = scmp.lt.s32.totalorder %s681_s28, %s398_s25  ;;  %p401_p4 = scmp.lt.s32.totalorder %s399_s11, %s393_s21 }
  0x7d   : > { %p396_p9 = pneg %p395_p8 }
  0x7e   : > { %p402_p10 = por %p401_p4, %p400_p5 }
  0x80   : > { %p403_p12 = pnand %p402_p10, %p396_p9 }
  0x82   : > { %406 = shalt.err (!%p403_p12)
}
  0x83   : > { %s407_s29 = scalar_lea.hbm %s152_s19, 128  ;;  %s411_s4 = scalar_lea.hbm %s726_s3, 1024 }
  0x84   : > { %p408_p13 = scmp.ne.s32.totalorder %s152_s19, %s407_s29  ;;  %p412_p6 = scmp.lt.u32.totalorder %s152_s19, %s726_s3 }
  0x85   : > { %p413_p7 = scmp.lt.u32.totalorder %s411_s4, %s407_s29  ;;  %p415_p11 = scmp.lt.u32.totalorder %s407_s29, %s152_s19 }
  0x86   : > { %p409_p0 = pnand %p408_p13, %p743_p1 }
  0x87   : > { %p414_p3 = por %p413_p7, %p412_p6 }
  0x88   : > { %p410_p2 = pneg %p409_p0 }
  0x89   : > { %p416_p8 = por %p415_p11, %p414_p3 }
  0x8b   : > { %p417_p9 = pnand %p416_p8, %p410_p2 }
  0x8d   : > { %420 = shalt.err (!%p417_p9)
}
  0x8e   : > { %261 = dma.vmem_to_hbm [thread:$0]  (%p743_p1), %s681_s28, 128, %s152_s19, %s139_s15  }
  0x8f PF: > { %p267_p5 = scmp.ge.s32.totalorder %s475_s26, 1  ;;  %s166_s12 = sand.u32 1, %s459_s22  }
  0x90   : > { %p744_p4 = scmp.ne.s32.totalorder %s731_s30, 0  ;;  %s167_s13 = scalar_lea.sflag [#allocation7], %s166_s12 }
  0x92   : > { %p264_p10 = pnand %p267_p5, %p744_p4 }
  0x94   : > { %454 = dma.done.wait (!%p264_p10), %s167_s13, 128  }
  0x95   : > { %456 = vsyncadd (!%p264_p10), %s167_s13, 4294967168  ;;  %s20_s26 = sadd.s32 1, %s475_s26   ;;  %s745_s22 = smov %s463_s23 }
  0x96   : > { %p17_p12 = scmp.ge.s32.totalorder %s20_s26, 9   ;;  %s746_s23 = smov %s566_s7 }
  0x97   : > { %s747_s24 = smov %s750_s0  ;;  %s748_s25 = smov %s754_s27 }
  0x98   :  { %19 = sbr.rel (!%p17_p12) target bundleno = 16 (0x10), region = 100 }
  0x9f   :  { %172 = vsyncpa [#allocation7], 1 }
  0xa0   :  { %174 = vsyncpa [#allocation7 + $0x1], 1 }
  0xa1   :  { %175 = vsyncmov [#allocation3] }
  0xa4   :  { %s176_s30 = vpop.sfrf %175 }
  0xa5   :  { %p251_p1 = scmp.ne.s32.totalorder %s176_s30, 0 }
  0xa7   :  { %180 = shalt.err (%p251_p1)  }

</bundles_post_ra>
